<compile_context>
chip_gen: v6e
topology: v6e:2x2x1
jax: 0.10.0
libtpu: 0.0.40
codegen_flags: <defaults>
</compile_context>

<pallas_src>
import math
import functools

import jax
import jax.numpy as jnp
from jax.experimental import pallas as pl
from jax.experimental.pallas import tpu as pltpu

# ---- head configuration (deterministic, synthetic) -------------------------
NUM_CLASS = 3
NUM_DIR_BINS = 2
DIR_OFFSET = math.pi / 4.0
DIR_LIMIT_OFFSET = 0.0
PERIOD = 2.0 * math.pi / NUM_DIR_BINS
INV_PERIOD = 1.0 / PERIOD
CODE_SIZE = 7                   # ResidualCoder, encode_angle_by_sincos=False
ANC_ROWS = 8                    # x, y, z, dx, dy, dz, r, precomputed diagonal
LANE = 128
MAX_SUBLANE_TILE = 512          # 512 * 128 = 65536 anchors per grid step
SUB_ALIGN = 16                  # sublane tile alignment (bf16 packs 2/sublane)


# ---- Pallas kernel: box decode + direction correction ----------------------
def decode_kernel(box_ref, anc_ref, dir_ref, out_ref):
    # box_ref: (1, CODE_SIZE,    TS, 128)  bf16/f32 box regression deltas
    # anc_ref: (1, ANC_ROWS,     TS, 128)  f32 anchors (+ precomputed diagonal)
    # dir_ref: (1, NUM_DIR_BINS, TS, 128)  bf16/f32 direction logits
    # out_ref: (1, CODE_SIZE,    TS, 128)  f32 decoded boxes
    # Slab-at-a-time: each statement keeps only a couple of (TS,128) temporaries
    # live, so the vld/vst slots (the binding units here) stay unclogged.
    f32 = jnp.float32

    # ResidualCoder.decode_torch
    diag = anc_ref[0, 7]
    out_ref[0, 0] = box_ref[0, 0].astype(f32) * diag + anc_ref[0, 0]
    out_ref[0, 1] = box_ref[0, 1].astype(f32) * diag + anc_ref[0, 1]
    dza = anc_ref[0, 5]
    out_ref[0, 2] = box_ref[0, 2].astype(f32) * dza + anc_ref[0, 2]
    out_ref[0, 3] = jnp.exp(box_ref[0, 3].astype(f32)) * anc_ref[0, 3]
    out_ref[0, 4] = jnp.exp(box_ref[0, 4].astype(f32)) * anc_ref[0, 4]
    out_ref[0, 5] = jnp.exp(box_ref[0, 5].astype(f32)) * dza
    rg = box_ref[0, 6].astype(f32) + anc_ref[0, 6]

    # direction bin = argmax over logits (ties -> first max, like jnp.argmax)
    if NUM_DIR_BINS == 2:
        best_idx = (dir_ref[0, 1].astype(f32) >
                    dir_ref[0, 0].astype(f32)).astype(f32)
    else:
        best_val = dir_ref[0, 0].astype(f32)
        best_idx = jnp.zeros_like(best_val)
        for b in range(1, NUM_DIR_BINS):
            v = dir_ref[0, b].astype(f32)
            take = v > best_val
            best_val = jnp.where(take, v, best_val)
            best_idx = jnp.where(take, f32(b), best_idx)

    # limit_period(rg - dir_offset, dir_limit_offset, period) + bin correction
    val = rg - DIR_OFFSET
    dir_rot = val - jnp.floor(val * INV_PERIOD + DIR_LIMIT_OFFSET) * PERIOD
    out_ref[0, 6] = dir_rot + DIR_OFFSET + PERIOD * best_idx


# ---- helpers ----------------------------------------------------------------
def _tiling(hw, napl):
    """Sublane count (minimal lane padding), tile size and tile count for the
    anchor/HW axis. Only pads HW to the next multiple of 128; the grid handles
    the ragged final sublane block."""
    n_sub = pl.cdiv(hw, LANE)           # sublane rows after minimal lane pad
    hw_pad = n_sub * LANE
    ts = n_sub if n_sub <= MAX_SUBLANE_TILE else MAX_SUBLANE_TILE
    # v7x: keep >= 2 units of parallel (napl, hw_tiles) work so both
    # TensorCores get a share of this memory-bound loop (no-op on v5e/v6e).
    if napl == 1 and n_sub > SUB_ALIGN and pl.cdiv(n_sub, ts) < 2:
        half = pl.cdiv(n_sub, 2)
        ts = max(SUB_ALIGN, pl.cdiv(half, SUB_ALIGN) * SUB_ALIGN)
    hw_tiles = pl.cdiv(n_sub, ts)
    return hw_pad, n_sub, ts, hw_tiles


def prepare_anchor_table(anchors, H, W, napl):
    """One-time host prep: (H*W*napl, 7) torch-ordered anchors ->
    (napl, 8, ceil(HW/128), 128) channels-first table with precomputed diag."""
    hw = H * W
    hw_pad, n_sub, _, _ = _tiling(hw, napl)
    a = jnp.asarray(anchors, jnp.float32).reshape(hw, napl, CODE_SIZE)
    a = jnp.transpose(a, (1, 2, 0))                               # (napl, 7, HW)
    diag = jnp.sqrt(a[:, 3:4] ** 2 + a[:, 4:5] ** 2)              # (napl, 1, HW)
    a = jnp.concatenate([a, diag], axis=1)                        # (napl, 8, HW)
    if hw_pad != hw:
        a = jnp.pad(a, ((0, 0), (0, 0), (0, hw_pad - hw)))
    return a.reshape(napl, ANC_ROWS, n_sub, LANE)


# ---- wrapper ----------------------------------------------------------------
@functools.partial(jax.jit, static_argnums=(4, 5, 6, 7))
def generate_predicted_boxes(cls_preds, box_preds, dir_cls_preds, anchor_table,
                             H, W, napl, channels_last=True):
    """AnchorHeadTemplate.generate_predicted_boxes consuming the channels-first
    (NCHW) conv-head outputs directly (the NHWC permute in PyTorch is plumbing).
    box/dir/cls may be bf16 or f32.

      cls_preds:     (B, napl*NUM_CLASS,    H, W)
      box_preds:     (B, napl*CODE_SIZE,    H, W)
      dir_cls_preds: (B, napl*NUM_DIR_BINS, H, W)
      anchor_table:  output of prepare_anchor_table (static, prepared once)

    channels_last=True  -> PyTorch semantics: (B, NA, num_class), (B, NA, 7)
                           with NA = H*W*napl in (h, w, anchor) order.
    channels_last=False -> lane-dense channels-first (B, napl, C, HW) outputs
                           (preferred for downstream TPU consumers: skips the
                           expensive (...,7)/(...,3) relayout HBM passes).
    """
    B = box_preds.shape[0]
    HW = H * W
    NA = HW * napl
    hw_pad, n_sub, ts, hw_tiles = _tiling(HW, napl)
    assert anchor_table.shape == (napl, ANC_ROWS, n_sub, LANE)

    def to_lane_dense(x, C):
        # Free row-major reshape; lane pad only when HW % 128 != 0.
        x3 = x.reshape(B * napl, C, HW)
        if hw_pad != HW:
            x3 = jnp.pad(x3, ((0, 0), (0, 0), (0, hw_pad - HW)))
        return x3.reshape(B * napl, C, n_sub, LANE)

    box4 = to_lane_dense(box_preds, CODE_SIZE)
    dir4 = to_lane_dense(dir_cls_preds, NUM_DIR_BINS)

    # batch innermost -> anchor tile block index unchanged, stays resident.
    grid = (napl, hw_tiles, B)

    out4 = pl.pallas_call(
        decode_kernel,
        out_shape=jax.ShapeDtypeStruct((B * napl, CODE_SIZE, n_sub, LANE),
                                       jnp.float32),
        grid_spec=pltpu.PrefetchScalarGridSpec(
            num_scalar_prefetch=0,
            grid=grid,
            in_specs=[
                pl.BlockSpec((1, CODE_SIZE, ts, LANE),
                             lambda a, t, b: (b * napl + a, 0, t, 0)),
                pl.BlockSpec((1, ANC_ROWS, ts, LANE),
                             lambda a, t, b: (a, 0, t, 0)),
                pl.BlockSpec((1, NUM_DIR_BINS, ts, LANE),
                             lambda a, t, b: (b * napl + a, 0, t, 0)),
            ],
            out_specs=pl.BlockSpec((1, CODE_SIZE, ts, LANE),
                                   lambda a, t, b: (b * napl + a, 0, t, 0)),
        ),
        compiler_params=pltpu.CompilerParams(
            dimension_semantics=("parallel", "parallel", "arbitrary"),
            vmem_limit_bytes=32 * 1024 * 1024),
    )(box4, anchor_table, dir4)

    box_cf = out4.reshape(B, napl, CODE_SIZE, hw_pad)[..., :HW]
    cls_cf = cls_preds.reshape(B, napl, NUM_CLASS, HW).astype(jnp.float32)

    if not channels_last:
        # Fast path: keep the kernel's lane-dense layout; downstream Pallas
        # consumers (NMS / top-k) should fuse any relayout they need.
        return cls_cf, box_cf

    # PyTorch-compatible (B, NA, C) layout (extra HBM relayout passes).
    batch_box_preds = jnp.transpose(box_cf, (0, 3, 1, 2)).reshape(B, NA, CODE_SIZE)
    batch_cls_preds = jnp.transpose(cls_cf, (0, 3, 1, 2)).reshape(B, NA, NUM_CLASS)
    return batch_cls_preds, batch_box_preds


# ---- deterministic anchor generation (synthetic AnchorGenerator) ------------
def make_anchors(H, W, pc_range, sizes, rotations):
    x_centers = jnp.linspace(pc_range[0], pc_range[3], W, dtype=jnp.float32)
    y_centers = jnp.linspace(pc_range[1], pc_range[4], H, dtype=jnp.float32)
    z_center = jnp.float32((pc_range[2] + pc_range[5]) / 2.0)
    yy, xx = jnp.meshgrid(y_centers, x_centers, indexing="ij")   # (H, W)
    per_loc = []
    for (dx, dy, dz) in sizes:
        for rot in rotations:
            a = jnp.stack(
                [xx, yy,
                 jnp.full_like(xx, z_center),
                 jnp.full_like(xx, dx),
                 jnp.full_like(xx, dy),
                 jnp.full_like(xx, dz),
                 jnp.full_like(xx, rot)], axis=-1)               # (H, W, 7)
            per_loc.append(a)
    anchors = jnp.stack(per_loc, axis=2)                         # (H, W, napl, 7)
    return anchors.reshape(-1, CODE_SIZE)


# ---- pure-JAX reference (mimics the exact torch NCHW->NHWC->decode path) -----
def torch_reference(cls_nchw, box_nchw, dir_nchw, anchors):
    B = box_nchw.shape[0]
    NA = anchors.shape[0]
    box = jnp.transpose(box_nchw, (0, 2, 3, 1)).reshape(B, NA, CODE_SIZE)
    dirp = jnp.transpose(dir_nchw, (0, 2, 3, 1)).reshape(B, NA, NUM_DIR_BINS)
    cls = jnp.transpose(cls_nchw, (0, 2, 3, 1)).reshape(B, NA, NUM_CLASS)
    cls = cls.astype(jnp.float32)

    xa, ya, za, dxa, dya, dza, ra = jnp.split(
        anchors[None].astype(jnp.float32), 7, axis=-1)
    xt, yt, zt, dxt, dyt, dzt, rt = jnp.split(box.astype(jnp.float32), 7, axis=-1)
    diagonal = jnp.sqrt(dxa ** 2 + dya ** 2)
    xg = xt * diagonal + xa
    yg = yt * diagonal + ya
    zg = zt * dza + za
    dxg = jnp.exp(dxt) * dxa
    dyg = jnp.exp(dyt) * dya
    dzg = jnp.exp(dzt) * dza
    rg = (rt + ra)[..., 0]

    dir_labels = jnp.argmax(dirp, axis=-1).astype(jnp.float32)
    val = rg - DIR_OFFSET
    dir_rot = val - jnp.floor(val * INV_PERIOD + DIR_LIMIT_OFFSET) * PERIOD
    rfin = dir_rot + DIR_OFFSET + PERIOD * dir_labels
    box_out = jnp.concatenate([xg, yg, zg, dxg, dyg, dzg, rfin[..., None]],
                              axis=-1)
    return cls, box_out


if __name__ == "__main__":
    key = jax.random.PRNGKey(0)
    B, H, W = 2, 16, 16
    pc_range = [0.0, -8.0, -3.0, 16.0, 8.0, 1.0]
    sizes = [(3.9, 1.6, 1.56)]
    rotations = [0.0, math.pi / 2.0]
    napl = len(sizes) * len(rotations)          # num_anchors_per_location = 2
    NA = H * W * napl                           # 512 anchors

    k1, k2, k3 = jax.random.split(key, 3)
    # bf16 NCHW conv-head outputs (what the head's convolutions produce on TPU)
    cls_nchw = jax.random.normal(
        k1, (B, napl * NUM_CLASS, H, W), jnp.float32).astype(jnp.bfloat16)
    box_nchw = (0.1 * jax.random.normal(
        k2, (B, napl * CODE_SIZE, H, W), jnp.float32)).astype(jnp.bfloat16)
    dir_nchw = jax.random.normal(
        k3, (B, napl * NUM_DIR_BINS, H, W), jnp.float32).astype(jnp.bfloat16)

    anchors = make_anchors(H, W, pc_range, sizes, rotations)     # (NA, 7)
    anchor_table = prepare_anchor_table(anchors, H, W, napl)     # one-time init

    # PyTorch-semantics path (channels_last=True)
    batch_cls_preds, batch_box_preds = generate_predicted_boxes(
        cls_nchw, box_nchw, dir_nchw, anchor_table, H, W, napl, True)
    jax.block_until_ready(batch_box_preds)
    jax.block_until_ready(batch_cls_preds)

    # correctness check against pure-JAX reference following the torch path
    ref_cls, ref_box = torch_reference(cls_nchw, box_nchw, dir_nchw, anchors)
    assert batch_cls_preds.shape == (B, NA, NUM_CLASS)
    assert batch_box_preds.shape == (B, NA, CODE_SIZE)
    assert jnp.allclose(batch_cls_preds, ref_cls, atol=1e-5, rtol=1e-5)
    assert jnp.allclose(batch_box_preds, ref_box, atol=1e-4, rtol=1e-4)

    # channels-first fast path (no post-kernel relayout HBM passes)
    cls_cf, box_cf = generate_predicted_boxes(
        cls_nchw, box_nchw, dir_nchw, anchor_table, H, W, napl, False)
    jax.block_until_ready(box_cf)
    box_cf_as_cl = jnp.transpose(box_cf, (0, 3, 1, 2)).reshape(B, NA, CODE_SIZE)
    cls_cf_as_cl = jnp.transpose(cls_cf, (0, 3, 1, 2)).reshape(B, NA, NUM_CLASS)
    assert jnp.allclose(box_cf_as_cl, ref_box, atol=1e-4, rtol=1e-4)
    assert jnp.allclose(cls_cf_as_cl, ref_cls, atol=1e-5, rtol=1e-5)

    # TODO(synk): training-time pieces (target assignment, focal / smooth-L1 /
    # dir losses, p2 supervision masks) are data-dependent gather/scatter host
    # logic with no clean single-kernel Pallas equivalent; the rarely-used
    # PreviousResidualDecoder extra angle flip is likewise omitted.
    print("KERNEL_OK")
</pallas_src>

<mosaic_0001>
module attributes {stable_mosaic.version = 11 : i64} {
  func.func @decode_kernel(%arg0: i32, %arg1: i32, %arg2: i32, %arg3: memref<1x7x2x128xbf16, #tpu.memory_space<vmem>>, %arg4: memref<1x8x2x128xf32, #tpu.memory_space<vmem>>, %arg5: memref<1x2x2x128xbf16, #tpu.memory_space<vmem>>, %arg6: memref<1x7x2x128xf32, #tpu.memory_space<vmem>>) attributes {dimension_semantics = [#tpu.dimension_semantics<parallel>, #tpu.dimension_semantics<parallel>, #tpu.dimension_semantics<arbitrary>], iteration_bounds = array<i64: 2, 1, 2>, scalar_prefetch = 0 : i64, scratch_operands = 0 : i64, tpu.core_type = #tpu.core_type<tc>, window_params = [{transform_indices = @transform_0, window_bounds = array<i64: 1, 7, 2, 128>}, {transform_indices = @transform_1, window_bounds = array<i64: 1, 8, 2, 128>}, {transform_indices = @transform_2, window_bounds = array<i64: 1, 2, 2, 128>}, {transform_indices = @transform_3, window_bounds = array<i64: 1, 7, 2, 128>}]} {
    %c0 = arith.constant 0 : index
    %c7 = arith.constant 7 : index
    %c0_0 = arith.constant 0 : index
    %c0_1 = arith.constant 0 : index
    %0 = vector.load %arg4[%c0, %c7, %c0_0, %c0_1] : memref<1x8x2x128xf32, #tpu.memory_space<vmem>>, vector<1x1x2x128xf32>
    %1 = vector.shape_cast %0 : vector<1x1x2x128xf32> to vector<2x128xf32>
    %c0_2 = arith.constant 0 : index
    %c0_3 = arith.constant 0 : index
    %c0_4 = arith.constant 0 : index
    %c0_5 = arith.constant 0 : index
    %2 = vector.load %arg3[%c0_2, %c0_3, %c0_4, %c0_5] : memref<1x7x2x128xbf16, #tpu.memory_space<vmem>>, vector<1x1x2x128xbf16>
    %3 = vector.shape_cast %2 : vector<1x1x2x128xbf16> to vector<2x128xbf16>
    %4 = arith.extf %3 : vector<2x128xbf16> to vector<2x128xf32>
    %5 = arith.mulf %4, %1 : vector<2x128xf32>
    %c0_6 = arith.constant 0 : index
    %c0_7 = arith.constant 0 : index
    %c0_8 = arith.constant 0 : index
    %c0_9 = arith.constant 0 : index
    %6 = vector.load %arg4[%c0_6, %c0_7, %c0_8, %c0_9] : memref<1x8x2x128xf32, #tpu.memory_space<vmem>>, vector<1x1x2x128xf32>
    %7 = vector.shape_cast %6 : vector<1x1x2x128xf32> to vector<2x128xf32>
    %8 = arith.addf %5, %7 : vector<2x128xf32>
    %c0_10 = arith.constant 0 : index
    %c0_11 = arith.constant 0 : index
    %c0_12 = arith.constant 0 : index
    %c0_13 = arith.constant 0 : index
    %9 = vector.load %arg6[%c0_10, %c0_11, %c0_12, %c0_13] : memref<1x7x2x128xf32, #tpu.memory_space<vmem>>, vector<1x1x2x128xf32>
    %10 = vector.shape_cast %9 : vector<1x1x2x128xf32> to vector<2x128xf32>
    %11 = vector.shape_cast %8 : vector<2x128xf32> to vector<1x1x2x128xf32>
    tpu.vector_store %arg6[%c0_10, %c0_11, %c0_12, %c0_13], %11 {strides = array<i32>} : memref<1x7x2x128xf32, #tpu.memory_space<vmem>>, vector<1x1x2x128xf32>,
    %c0_14 = arith.constant 0 : index
    %c1 = arith.constant 1 : index
    %c0_15 = arith.constant 0 : index
    %c0_16 = arith.constant 0 : index
    %12 = vector.load %arg3[%c0_14, %c1, %c0_15, %c0_16] : memref<1x7x2x128xbf16, #tpu.memory_space<vmem>>, vector<1x1x2x128xbf16>
    %13 = vector.shape_cast %12 : vector<1x1x2x128xbf16> to vector<2x128xbf16>
    %14 = arith.extf %13 : vector<2x128xbf16> to vector<2x128xf32>
    %15 = arith.mulf %14, %1 : vector<2x128xf32>
    %c0_17 = arith.constant 0 : index
    %c1_18 = arith.constant 1 : index
    %c0_19 = arith.constant 0 : index
    %c0_20 = arith.constant 0 : index
    %16 = vector.load %arg4[%c0_17, %c1_18, %c0_19, %c0_20] : memref<1x8x2x128xf32, #tpu.memory_space<vmem>>, vector<1x1x2x128xf32>
    %17 = vector.shape_cast %16 : vector<1x1x2x128xf32> to vector<2x128xf32>
    %18 = arith.addf %15, %17 : vector<2x128xf32>
    %c0_21 = arith.constant 0 : index
    %c1_22 = arith.constant 1 : index
    %c0_23 = arith.constant 0 : index
    %c0_24 = arith.constant 0 : index
    %19 = vector.load %arg6[%c0_21, %c1_22, %c0_23, %c0_24] : memref<1x7x2x128xf32, #tpu.memory_space<vmem>>, vector<1x1x2x128xf32>
    %20 = vector.shape_cast %19 : vector<1x1x2x128xf32> to vector<2x128xf32>
    %21 = vector.shape_cast %18 : vector<2x128xf32> to vector<1x1x2x128xf32>
    tpu.vector_store %arg6[%c0_21, %c1_22, %c0_23, %c0_24], %21 {strides = array<i32>} : memref<1x7x2x128xf32, #tpu.memory_space<vmem>>, vector<1x1x2x128xf32>,
    %c0_25 = arith.constant 0 : index
    %c5 = arith.constant 5 : index
    %c0_26 = arith.constant 0 : index
    %c0_27 = arith.constant 0 : index
    %22 = vector.load %arg4[%c0_25, %c5, %c0_26, %c0_27] : memref<1x8x2x128xf32, #tpu.memory_space<vmem>>, vector<1x1x2x128xf32>
    %23 = vector.shape_cast %22 : vector<1x1x2x128xf32> to vector<2x128xf32>
    %c0_28 = arith.constant 0 : index
    %c2 = arith.constant 2 : index
    %c0_29 = arith.constant 0 : index
    %c0_30 = arith.constant 0 : index
    %24 = vector.load %arg3[%c0_28, %c2, %c0_29, %c0_30] : memref<1x7x2x128xbf16, #tpu.memory_space<vmem>>, vector<1x1x2x128xbf16>
    %25 = vector.shape_cast %24 : vector<1x1x2x128xbf16> to vector<2x128xbf16>
    %26 = arith.extf %25 : vector<2x128xbf16> to vector<2x128xf32>
    %27 = arith.mulf %26, %23 : vector<2x128xf32>
    %c0_31 = arith.constant 0 : index
    %c2_32 = arith.constant 2 : index
    %c0_33 = arith.constant 0 : index
    %c0_34 = arith.constant 0 : index
    %28 = vector.load %arg4[%c0_31, %c2_32, %c0_33, %c0_34] : memref<1x8x2x128xf32, #tpu.memory_space<vmem>>, vector<1x1x2x128xf32>
    %29 = vector.shape_cast %28 : vector<1x1x2x128xf32> to vector<2x128xf32>
    %30 = arith.addf %27, %29 : vector<2x128xf32>
    %c0_35 = arith.constant 0 : index
    %c2_36 = arith.constant 2 : index
    %c0_37 = arith.constant 0 : index
    %c0_38 = arith.constant 0 : index
    %31 = vector.load %arg6[%c0_35, %c2_36, %c0_37, %c0_38] : memref<1x7x2x128xf32, #tpu.memory_space<vmem>>, vector<1x1x2x128xf32>
    %32 = vector.shape_cast %31 : vector<1x1x2x128xf32> to vector<2x128xf32>
    %33 = vector.shape_cast %30 : vector<2x128xf32> to vector<1x1x2x128xf32>
    tpu.vector_store %arg6[%c0_35, %c2_36, %c0_37, %c0_38], %33 {strides = array<i32>} : memref<1x7x2x128xf32, #tpu.memory_space<vmem>>, vector<1x1x2x128xf32>,
    %c0_39 = arith.constant 0 : index
    %c3 = arith.constant 3 : index
    %c0_40 = arith.constant 0 : index
    %c0_41 = arith.constant 0 : index
    %34 = vector.load %arg3[%c0_39, %c3, %c0_40, %c0_41] : memref<1x7x2x128xbf16, #tpu.memory_space<vmem>>, vector<1x1x2x128xbf16>
    %35 = vector.shape_cast %34 : vector<1x1x2x128xbf16> to vector<2x128xbf16>
    %36 = arith.extf %35 : vector<2x128xbf16> to vector<2x128xf32>
    %37 = math.exp %36 : vector<2x128xf32>
    %c0_42 = arith.constant 0 : index
    %c3_43 = arith.constant 3 : index
    %c0_44 = arith.constant 0 : index
    %c0_45 = arith.constant 0 : index
    %38 = vector.load %arg4[%c0_42, %c3_43, %c0_44, %c0_45] : memref<1x8x2x128xf32, #tpu.memory_space<vmem>>, vector<1x1x2x128xf32>
    %39 = vector.shape_cast %38 : vector<1x1x2x128xf32> to vector<2x128xf32>
    %40 = arith.mulf %37, %39 : vector<2x128xf32>
    %c0_46 = arith.constant 0 : index
    %c3_47 = arith.constant 3 : index
    %c0_48 = arith.constant 0 : index
    %c0_49 = arith.constant 0 : index
    %41 = vector.load %arg6[%c0_46, %c3_47, %c0_48, %c0_49] : memref<1x7x2x128xf32, #tpu.memory_space<vmem>>, vector<1x1x2x128xf32>
    %42 = vector.shape_cast %41 : vector<1x1x2x128xf32> to vector<2x128xf32>
    %43 = vector.shape_cast %40 : vector<2x128xf32> to vector<1x1x2x128xf32>
    tpu.vector_store %arg6[%c0_46, %c3_47, %c0_48, %c0_49], %43 {strides = array<i32>} : memref<1x7x2x128xf32, #tpu.memory_space<vmem>>, vector<1x1x2x128xf32>,
    %c0_50 = arith.constant 0 : index
    %c4 = arith.constant 4 : index
    %c0_51 = arith.constant 0 : index
    %c0_52 = arith.constant 0 : index
    %44 = vector.load %arg3[%c0_50, %c4, %c0_51, %c0_52] : memref<1x7x2x128xbf16, #tpu.memory_space<vmem>>, vector<1x1x2x128xbf16>
    %45 = vector.shape_cast %44 : vector<1x1x2x128xbf16> to vector<2x128xbf16>
    %46 = arith.extf %45 : vector<2x128xbf16> to vector<2x128xf32>
    %47 = math.exp %46 : vector<2x128xf32>
    %c0_53 = arith.constant 0 : index
    %c4_54 = arith.constant 4 : index
    %c0_55 = arith.constant 0 : index
    %c0_56 = arith.constant 0 : index
    %48 = vector.load %arg4[%c0_53, %c4_54, %c0_55, %c0_56] : memref<1x8x2x128xf32, #tpu.memory_space<vmem>>, vector<1x1x2x128xf32>
    %49 = vector.shape_cast %48 : vector<1x1x2x128xf32> to vector<2x128xf32>
    %50 = arith.mulf %47, %49 : vector<2x128xf32>
    %c0_57 = arith.constant 0 : index
    %c4_58 = arith.constant 4 : index
    %c0_59 = arith.constant 0 : index
    %c0_60 = arith.constant 0 : index
    %51 = vector.load %arg6[%c0_57, %c4_58, %c0_59, %c0_60] : memref<1x7x2x128xf32, #tpu.memory_space<vmem>>, vector<1x1x2x128xf32>
    %52 = vector.shape_cast %51 : vector<1x1x2x128xf32> to vector<2x128xf32>
    %53 = vector.shape_cast %50 : vector<2x128xf32> to vector<1x1x2x128xf32>
    tpu.vector_store %arg6[%c0_57, %c4_58, %c0_59, %c0_60], %53 {strides = array<i32>} : memref<1x7x2x128xf32, #tpu.memory_space<vmem>>, vector<1x1x2x128xf32>,
    %c0_61 = arith.constant 0 : index
    %c5_62 = arith.constant 5 : index
    %c0_63 = arith.constant 0 : index
    %c0_64 = arith.constant 0 : index
    %54 = vector.load %arg3[%c0_61, %c5_62, %c0_63, %c0_64] : memref<1x7x2x128xbf16, #tpu.memory_space<vmem>>, vector<1x1x2x128xbf16>
    %55 = vector.shape_cast %54 : vector<1x1x2x128xbf16> to vector<2x128xbf16>
    %56 = arith.extf %55 : vector<2x128xbf16> to vector<2x128xf32>
    %57 = math.exp %56 : vector<2x128xf32>
    %58 = arith.mulf %57, %23 : vector<2x128xf32>
    %c0_65 = arith.constant 0 : index
    %c5_66 = arith.constant 5 : index
    %c0_67 = arith.constant 0 : index
    %c0_68 = arith.constant 0 : index
    %59 = vector.load %arg6[%c0_65, %c5_66, %c0_67, %c0_68] : memref<1x7x2x128xf32, #tpu.memory_space<vmem>>, vector<1x1x2x128xf32>
    %60 = vector.shape_cast %59 : vector<1x1x2x128xf32> to vector<2x128xf32>
    %61 = vector.shape_cast %58 : vector<2x128xf32> to vector<1x1x2x128xf32>
    tpu.vector_store %arg6[%c0_65, %c5_66, %c0_67, %c0_68], %61 {strides = array<i32>} : memref<1x7x2x128xf32, #tpu.memory_space<vmem>>, vector<1x1x2x128xf32>,
    %c0_69 = arith.constant 0 : index
    %c6 = arith.constant 6 : index
    %c0_70 = arith.constant 0 : index
    %c0_71 = arith.constant 0 : index
    %62 = vector.load %arg3[%c0_69, %c6, %c0_70, %c0_71] : memref<1x7x2x128xbf16, #tpu.memory_space<vmem>>, vector<1x1x2x128xbf16>
    %63 = vector.shape_cast %62 : vector<1x1x2x128xbf16> to vector<2x128xbf16>
    %64 = arith.extf %63 : vector<2x128xbf16> to vector<2x128xf32>
    %c0_72 = arith.constant 0 : index
    %c6_73 = arith.constant 6 : index
    %c0_74 = arith.constant 0 : index
    %c0_75 = arith.constant 0 : index
    %65 = vector.load %arg4[%c0_72, %c6_73, %c0_74, %c0_75] : memref<1x8x2x128xf32, #tpu.memory_space<vmem>>, vector<1x1x2x128xf32>
    %66 = vector.shape_cast %65 : vector<1x1x2x128xf32> to vector<2x128xf32>
    %67 = arith.addf %64, %66 : vector<2x128xf32>
    %c0_76 = arith.constant 0 : index
    %c1_77 = arith.constant 1 : index
    %c0_78 = arith.constant 0 : index
    %c0_79 = arith.constant 0 : index
    %68 = vector.load %arg5[%c0_76, %c1_77, %c0_78, %c0_79] : memref<1x2x2x128xbf16, #tpu.memory_space<vmem>>, vector<1x1x2x128xbf16>
    %69 = vector.shape_cast %68 : vector<1x1x2x128xbf16> to vector<2x128xbf16>
    %70 = arith.extf %69 : vector<2x128xbf16> to vector<2x128xf32>
    %c0_80 = arith.constant 0 : index
    %c0_81 = arith.constant 0 : index
    %c0_82 = arith.constant 0 : index
    %c0_83 = arith.constant 0 : index
    %71 = vector.load %arg5[%c0_80, %c0_81, %c0_82, %c0_83] : memref<1x2x2x128xbf16, #tpu.memory_space<vmem>>, vector<1x1x2x128xbf16>
    %72 = vector.shape_cast %71 : vector<1x1x2x128xbf16> to vector<2x128xbf16>
    %73 = arith.extf %72 : vector<2x128xbf16> to vector<2x128xf32>
    %74 = arith.cmpf ogt, %70, %73 : vector<2x128xf32>
    %75 = arith.extui %74 : vector<2x128xi1> to vector<2x128xi32>
    %76 = arith.sitofp %75 : vector<2x128xi32> to vector<2x128xf32>
    %cst = arith.constant 0.785398185 : f32
    %77 = vector.broadcast %cst : f32 to vector<2x128xf32>
    %78 = arith.subf %67, %77 : vector<2x128xf32>
    %cst_84 = arith.constant 0.318309873 : f32
    %79 = vector.broadcast %cst_84 : f32 to vector<2x128xf32>
    %80 = arith.mulf %78, %79 : vector<2x128xf32>
    %cst_85 = arith.constant 0.000000e+00 : f32
    %81 = vector.broadcast %cst_85 : f32 to vector<2x128xf32>
    %82 = arith.addf %80, %81 : vector<2x128xf32>
    %83 = math.floor %82 : vector<2x128xf32>
    %cst_86 = arith.constant 3.14159274 : f32
    %84 = vector.broadcast %cst_86 : f32 to vector<2x128xf32>
    %85 = arith.mulf %83, %84 : vector<2x128xf32>
    %86 = arith.subf %78, %85 : vector<2x128xf32>
    %cst_87 = arith.constant 0.785398185 : f32
    %87 = vector.broadcast %cst_87 : f32 to vector<2x128xf32>
    %88 = arith.addf %86, %87 : vector<2x128xf32>
    %cst_88 = arith.constant 3.14159274 : f32
    %89 = vector.broadcast %cst_88 : f32 to vector<2x128xf32>
    %90 = arith.mulf %89, %76 : vector<2x128xf32>
    %91 = arith.addf %88, %90 : vector<2x128xf32>
    %c0_89 = arith.constant 0 : index
    %c6_90 = arith.constant 6 : index
    %c0_91 = arith.constant 0 : index
    %c0_92 = arith.constant 0 : index
    %92 = vector.load %arg6[%c0_89, %c6_90, %c0_91, %c0_92] : memref<1x7x2x128xf32, #tpu.memory_space<vmem>>, vector<1x1x2x128xf32>
    %93 = vector.shape_cast %92 : vector<1x1x2x128xf32> to vector<2x128xf32>
    %94 = vector.shape_cast %91 : vector<2x128xf32> to vector<1x1x2x128xf32>
    tpu.vector_store %arg6[%c0_89, %c6_90, %c0_91, %c0_92], %94 {strides = array<i32>} : memref<1x7x2x128xf32, #tpu.memory_space<vmem>>, vector<1x1x2x128xf32>,
    return
  }
  func.func @transform_0(%arg0: i32, %arg1: i32, %arg2: i32) -> (i32, i32, i32, i32) {
    %c2_i32 = arith.constant 2 : i32
    %0 = arith.muli %arg2, %c2_i32 : i32
    %1 = arith.addi %0, %arg0 : i32
    %c0_i32 = arith.constant 0 : i32
    %c0_i32_0 = arith.constant 0 : i32
    %c0_i32_1 = arith.constant 0 : i32
    return %1, %c0_i32, %arg1, %c0_i32_0 : i32, i32, i32, i32
  }
  func.func @transform_1(%arg0: i32, %arg1: i32, %arg2: i32) -> (i32, i32, i32, i32) {
    %c0_i32 = arith.constant 0 : i32
    %c0_i32_0 = arith.constant 0 : i32
    %c0_i32_1 = arith.constant 0 : i32
    return %arg0, %c0_i32, %arg1, %c0_i32_0 : i32, i32, i32, i32
  }
  func.func @transform_2(%arg0: i32, %arg1: i32, %arg2: i32) -> (i32, i32, i32, i32) {
    %c2_i32 = arith.constant 2 : i32
    %0 = arith.muli %arg2, %c2_i32 : i32
    %1 = arith.addi %0, %arg0 : i32
    %c0_i32 = arith.constant 0 : i32
    %c0_i32_0 = arith.constant 0 : i32
    %c0_i32_1 = arith.constant 0 : i32
    return %1, %c0_i32, %arg1, %c0_i32_0 : i32, i32, i32, i32
  }
  func.func @transform_3(%arg0: i32, %arg1: i32, %arg2: i32) -> (i32, i32, i32, i32) {
    %c2_i32 = arith.constant 2 : i32
    %0 = arith.muli %arg2, %c2_i32 : i32
    %1 = arith.addi %0, %arg0 : i32
    %c0_i32 = arith.constant 0 : i32
    %c0_i32_0 = arith.constant 0 : i32
    %c0_i32_1 = arith.constant 0 : i32
    return %1, %c0_i32, %arg1, %c0_i32_0 : i32, i32, i32, i32
  }
}

</mosaic_0001>

<bundles_post_ra>
// kernel: generate_predicted_boxes.1
= control target key start
LH: loop header
LB: loop body
LE: loop exit
PB: predicated region body
PF: predicated region fallthrough
CT: control target
= control target key end

     0   :  { %s663_s12 = smov 0   ;;  %s665_s13 = smov 0   ;;  %s744_s0 = inlined_call_operand.vmem [shape: bf16[4,7,2,128], index: 0, kind: input, shape index: {}]   ;;  %s745_s1 = inlined_call_operand.vmem [shape: f32[2,8,2,128], index: 1, kind: input, shape index: {}]   ;;  %s746_s2 = inlined_call_operand.vmem [shape: bf16[4,2,2,128], index: 2, kind: input, shape index: {}]   ;;  %s747_s3 = inlined_call_operand.vmem [shape: f32[4,7,2,128], index: 3, kind: output, shape index: {}]  }
   0x1   :  { %s667_s14 = smov 0   ;;  %s669_s15 = smov 0  }
   0x2   :  { %s671_s16 = smov 0  }
   0x3 LB: > { %s25_s17 = sadd.s32 1, %s632_s14  ;;  %s32_s18 = sadd.s32 1, %s636_s15  ;;  %s640_s16 = sphi %s671_s16, %s13_s16   ;;  %s636_s15 = sphi %s669_s15, %s751_s15   ;;  %s632_s14 = sphi %s667_s14, %s750_s14   ;;  %s628_s13 = sphi %s665_s13, %s749_s13   ;;  %s624_s12 = sphi %s663_s12, %s748_s12  }
   0x4   : > { %p26_p0 = scmp.ge.s32.totalorder %s25_s17, 2  ;;  %p520_p1 = scmp.ge.s32.totalorder %s640_s16, 1 }
   0x5   : > { %p211_p2 = scmp.lt.s32.totalorder %s640_s16, 5 }
   0x6   : > { %s753_s17 = smov (%p26_p0, %s25_s17), 0  ;;  %s755_s18 = smov (!%p26_p0, %s32_s18), %s636_s15 }
   0x7   : > { %p212_p3 = pnand %p520_p1, %p211_p2  ;;  %p34_p4 = scmp.ge.s32.totalorder %s755_s18, 2 }
   0x8   : > { %s521_s19 = sshll.u32 (!%p212_p3), %s624_s12, 1  ;;  %p272_p5 = scmp.lt.s32.totalorder (!%p212_p3), %s628_s13, 1 }
   0x9   : > { %s757_s18 = smov (%p34_p4, %s755_s18), 0  ;;  %215 = sbr.rel (%p212_p3) target bundleno = 44 (0x2c), region = 32 }
   0xa   : > { %s262_s20 = sadd.s32 (!%p212_p3), %s628_s13, %s521_s19 }
   0xb   : > { %p263_p6 = scmp.lt.s32.totalorder (!%p212_p3), %s262_s20, 3 }
   0xe   : > { %s759_s13 = smov (!%p272_p5, %s628_s13), 1  ;;  %s761_s20 = smov (!%p263_p6, %s262_s20), 3  ;;  %v642_v37 = vmov 0.0  }
   0xf   : > { %s552_s21 = sshll.u32 %s759_s13, 4  ;;  %s553_s22 = smul.u32 7, %s761_s20 }
  0x10   : > { %s699_s25 = scalar_lea.vmem %s745_s1, %s552_s21  ;;  %s525_s26 = sshll.u32 %s761_s20, 1 }
  0x11   : > { %s269_s29 = scalar_lea.vmem %s744_s0, %s553_s22  ;;  %s554_s30 = smul.u32 14, %s761_s20  ;;  %v528_v0 = vld [vmem:[%s699_s25 + $0xe] sm:$0x3]  ;;  %v532_v1 = vld [vmem:[%s699_s25 + $0xa] sm:$0x3] }
  0x12   : > { %v305_v2 = vld [vmem:[%s269_s29] sm:$0x1]  ;;  %v529_v4 = vld [vmem:[%s269_s29 + $0x1] sm:$0x1]  ;;  %v533_v5 = vld [vmem:[%s269_s29 + $0x2] sm:$0x1]  ;;  %s288_s6 = scalar_lea.vmem %s746_s2, %s525_s26 }
  0x13   : > { %v308_v3 = vld [vmem:[%s699_s25] sm:$0x3]  ;;  %v306_v6 = vunpack.c.l.bf16 %v305_v2  ;;  %v313_v7 = vunpack.c.l.bf16 %v529_v4  ;;  %v530_v8 = vld [vmem:[%s699_s25 + $0x2] sm:$0x3]  ;;  %v324_v9 = vunpack.c.l.bf16 %v533_v5  ;;  %v539_v11 = vld [vmem:[%s269_s29 + $0x4] sm:$0x1]  ;;  %s718_s9 = scalar_lea.vmem %s747_s3, %s554_s30 }
  0x14   : > { %v536_v10 = vld [vmem:[%s269_s29 + $0x3] sm:$0x1]  ;;  %v534_v12 = vld [vmem:[%s699_s25 + $0x4] sm:$0x3]  ;;  %v343_v14 = vunpack.c.l.bf16 %v539_v11  ;;  %v544_v16 = vld [vmem:[%s269_s29 + $0x6] sm:$0x1] }
  0x15   : > { %v333_v13 = vunpack.c.l.bf16 %v536_v10  ;;  %v542_v15 = vld [vmem:[%s269_s29 + $0x5] sm:$0x1]  ;;  %v307_v17 = vmul.f32 %v528_v0, %v306_v6  ;;  %v314_v18 = vmul.f32 %v528_v0, %v313_v7  ;;  %v325_v19 = vmul.f32 %v532_v1, %v324_v9  ;;  %v545_v21 = vld [vmem:[%s699_s25 + $0xc] sm:$0x3]  ;;  %v546_v22 = vld [vmem:[%s288_s6 + $0x1] sm:$0x1] }
  0x16   : > { %v353_v20 = vunpack.c.l.bf16 %v542_v15  ;;  %v368_v23 = vld [vmem:[%s288_s6] sm:$0x1]  ;;  %v344_v25 = vmul.f32 1.442695, %v343_v14  ;;  %v361_v26 = vunpack.c.l.bf16 %v544_v16  ;;  %v367_v32 = vunpack.c.l.bf16 %v546_v22  ;;  %v537_v42 = vld [vmem:[%s699_s25 + $0x6] sm:$0x3] }
  0x17   : > { %v334_v24 = vmul.f32 1.442695, %v333_v13  ;;  %v309_v27 = vadd.f32 %v308_v3, %v307_v17  ;;  %v317_v28 = vadd.f32 %v530_v8, %v314_v18  ;;  %v328_v29 = vadd.f32 %v534_v12, %v325_v19  ;;  %v540_v43 = vld [vmem:[%s699_s25 + $0x8] sm:$0x3] }
  0x18   : > { %v354_v30 = vmul.f32 1.442695, %v353_v20  ;;  %v364_v31 = vadd.f32 %v545_v21, %v361_v26  ;;  %v369_v33 = vunpack.c.l.bf16 %v368_v23 }
  0x19   : > { %596 = vpow2.f32 %v334_v24  ;;  %310 = vst [vmem:[%s718_s9] sm:$0x3] %v309_v27  ;;  %531 = vst [vmem:[%s718_s9 + $0x2] sm:$0x3] %v317_v28 }
  0x1a   : > { %535 = vst [vmem:[%s718_s9 + $0x4] sm:$0x3] %v328_v29  ;;  %598 = vpow2.f32 %v344_v25  ;;  %v548_v34 = vadd.f32 -0.7853982, %v364_v31  ;;  %vm370_vm0 = vcmp.gt.f32.partialorder %v367_v32, %v369_v33 }
  0x1b   : > { %600 = vpow2.f32 %v354_v30  ;;  %v547_v38 = vsel %vm370_vm0, 1.0, %v642_v37 }
  0x1c   : > { %v374_v35 = vmul.f32 0.31830987, %v548_v34  ;;  %v380_v41 = vmul.f32 3.1415927, %v547_v38 }
  0x1e   : > { %v376_v36 = vfloor.f32 %v374_v35 }
  0x20   : > { %v377_v39 = vmul.f32 3.1415927, %v376_v36 }
  0x22   : > { %v378_v40 = vsub.f32 %v548_v34, %v377_v39 }
  0x24   : > { %v379_v44 = vadd.f32 0.7853982, %v378_v40 }
  0x26   : > { %v597_v45 = vpop.eup %596  ;;  %v381_v48 = vadd.f32 %v380_v41, %v379_v44 }
  0x27   : > { %v599_v46 = vpop.eup %598  ;;  %v338_v47 = vmul.f32 %v597_v45, %v537_v42 }
  0x28   : > { %v601_v49 = vpop.eup %600  ;;  %v348_v50 = vmul.f32 %v599_v46, %v540_v43  ;;  %549 = vst [vmem:[%s718_s9 + $0xc] sm:$0x3] %v381_v48 }
  0x29   : > { %538 = vst [vmem:[%s718_s9 + $0x6] sm:$0x3] %v338_v47  ;;  %v356_v51 = vmul.f32 %v601_v49, %v532_v1 }
  0x2a   : > { %541 = vst [vmem:[%s718_s9 + $0x8] sm:$0x3] %v348_v50 }
  0x2b   : > { %543 = vst [vmem:[%s718_s9 + $0xa] sm:$0x3] %v356_v51 }
  0x2c PF: > { %s13_s16 = sadd.s32 1, %s640_s16   ;;  %s748_s12 = smov %s632_s14 }
  0x2d   : > { %p10_p7 = scmp.ge.s32.totalorder %s13_s16, 6   ;;  %s749_s13 = smov %s636_s15 }
  0x2e   : > { %s750_s14 = smov %s753_s17  ;;  %s751_s15 = smov %s757_s18 }
  0x2f   :  { %12 = sbr.rel (!%p10_p7) target bundleno = 3 (0x3), region = 88 }

</bundles_post_ra>
